<compile_context>
chip_gen: v5e
topology: v5e:2x2
jax: 0.10.0
libtpu: 0.0.40
codegen_flags: <defaults>
</compile_context>

<pallas_src>
import functools
import math
from typing import Callable, Dict

import jax
import jax.numpy as jnp
from jax.experimental import pallas as pl
from jax.experimental.pallas import tpu as pltpu


# ---------------------------------------------------------------------------
# Element-wise activation bodies (run INSIDE the Pallas kernel).
# ---------------------------------------------------------------------------
def _gelu_exact(x):
    # matches torch.nn.functional.gelu (erf formulation)
    return 0.5 * x * (1.0 + jax.lax.erf(x * (1.0 / math.sqrt(2.0))))


_ELEMENTWISE_FNS: Dict[str, Callable] = {
    "relu": lambda x: jnp.maximum(x, 0.0),
    "gelu": _gelu_exact,
    "tanh": jnp.tanh,
    "sigmoid": jax.nn.sigmoid,
    "silu": lambda x: x * jax.nn.sigmoid(x),
    "identity": lambda x: x,
}

# Approximate transcendental ops per element (advisory cost estimate only).
_TRANSCENDENTALS_PER_ELEM = {
    "relu": 0, "gelu": 1, "tanh": 1, "sigmoid": 1, "silu": 1, "identity": 0,
}

_LANES = 128
_TARGET_BLOCK_BYTES = 2 * 1024 * 1024   # ~2 MiB per input block (HBM streaming sweet spot)
_SMALL_DIRECT_BYTES = 128 * 1024        # ragged inputs up to this size skip padding


def _activation_kernel(x_ref, o_ref, *, act_fn):
    o_ref[...] = act_fn(x_ref[...]).astype(o_ref.dtype)


def _sublane_multiple(dtype) -> int:
    # 8 sublanes for 32-bit, 16 for 16-bit, 32 for 8-bit packed dtypes.
    itemsize = jnp.dtype(dtype).itemsize
    return max(8, 32 // max(itemsize, 1))


def _pick_row_tile(dtype) -> int:
    itemsize = jnp.dtype(dtype).itemsize
    sub = _sublane_multiple(dtype)
    tile = _TARGET_BLOCK_BYTES // (_LANES * itemsize)
    return max(sub, (tile // sub) * sub)


def _apply_activation_pallas(x: jax.Array, *, name: str) -> jax.Array:
    act_fn = _ELEMENTWISE_FNS[name]
    orig_shape = x.shape
    orig_dtype = x.dtype
    n = int(math.prod(orig_shape)) if orig_shape else 1
    if n == 0:
        return x
    itemsize = jnp.dtype(orig_dtype).itemsize
    kernel = functools.partial(_activation_kernel, act_fn=act_fn)
    cost = pl.CostEstimate(
        flops=2 * n,
        transcendentals=_TRANSCENDENTALS_PER_ELEM[name] * n,
        bytes_accessed=2 * n * itemsize,
    )

    flat = x.reshape(-1)
    lane_pad = (-n) % _LANES

    # --- Small, non-lane-aligned input: one (1, n) block == full array dims.
    # Avoids the pad + slice round trips entirely.  (The (1, n) VMEM layout
    # pads sublanes 8x, so restrict this path to small inputs.)
    if lane_pad and n * itemsize <= _SMALL_DIRECT_BYTES:
        slab = flat.reshape(1, n)
        out = pl.pallas_call(
            kernel,
            out_shape=jax.ShapeDtypeStruct((1, n), orig_dtype),
            grid_spec=pltpu.PrefetchScalarGridSpec(
                num_scalar_prefetch=0,
                grid=(1,),
                in_specs=[pl.BlockSpec((1, n), lambda i: (0, 0))],
                out_specs=pl.BlockSpec((1, n), lambda i: (0, 0)),
            ),
            compiler_params=pltpu.CompilerParams(
                dimension_semantics=("arbitrary",),
                vmem_limit_bytes=16 * 1024 * 1024,
            ),
            cost_estimate=cost,
        )(slab)
        return out.reshape(orig_shape)

    # --- Rare large ragged fallback: one small pad (< 128 elems) + slice.
    if lane_pad:
        flat = jnp.pad(flat, (0, lane_pad))

    rows = flat.shape[0] // _LANES
    slab = flat.reshape(rows, _LANES)

    row_tile = _pick_row_tile(orig_dtype)
    if rows <= row_tile:
        # Single block equal to the full array dims (always a legal block shape).
        row_tile = rows
        grid = (1,)
    else:
        # Partial last block (rows % row_tile != 0) is handled by Pallas masking.
        grid = (pl.cdiv(rows, row_tile),)

    block_bytes = row_tile * _LANES * itemsize
    # in + out, double-buffered, plus headroom; clamp to a budget that is safe
    # on every generation (v5e/v6e 128 MiB physical, v7x 64 MiB physical).
    vmem_limit = int(min(48 * 1024 * 1024, max(16 * 1024 * 1024, 6 * block_bytes)))

    out = pl.pallas_call(
        kernel,
        out_shape=jax.ShapeDtypeStruct((rows, _LANES), orig_dtype),
        grid_spec=pltpu.PrefetchScalarGridSpec(
            num_scalar_prefetch=0,
            grid=grid,
            in_specs=[pl.BlockSpec((row_tile, _LANES), lambda i: (i, 0))],
            out_specs=pl.BlockSpec((row_tile, _LANES), lambda i: (i, 0)),
        ),
        compiler_params=pltpu.CompilerParams(
            dimension_semantics=("parallel",),
            vmem_limit_bytes=vmem_limit,
        ),
        cost_estimate=cost,
    )(slab)

    if lane_pad:
        return out.reshape(-1)[:n].reshape(orig_shape)
    return out.reshape(orig_shape)


class Activation:
    """JAX/Pallas port of the generic element-wise Activation module."""

    # Each registry entry is jitted so the reshape + pallas_call + reshape
    # sequence compiles once and dispatches as a single executable.
    _registry: Dict[str, Callable] = {
        name: jax.jit(functools.partial(_apply_activation_pallas, name=name))
        for name in _ELEMENTWISE_FNS
    }

    def __init__(self, name: str) -> None:
        if name not in Activation._registry:
            raise Exception(
                f"Unrecognized activation `{name}`. Supported options: "
                f"{', '.join(Activation._registry)}."
            )
        self._activation = Activation._registry[name]
        self._name = name

    def __repr__(self) -> str:
        return f"Activation({self._name})"

    def __call__(self, *args, **kwargs):
        return self.forward(*args, **kwargs)

    def forward(self, *args, **kwargs):
        return self._activation(*args, **kwargs)


if __name__ == "__main__":
    key = jax.random.PRNGKey(0)
    k0, k1, k2 = jax.random.split(key, 3)

    # NCHW-style input, same convention as the PyTorch side (layout-invariant op).
    x_small = jax.random.normal(k0, (2, 4, 16, 16), dtype=jnp.float32)
    # Exercises the ragged (non-128-aligned) direct single-block path.
    x_ragged = jax.random.normal(k1, (3, 5, 7), dtype=jnp.float32)
    # Exercises the multi-block grid + masked partial last block path (~3 MiB f32).
    x_big = jax.random.normal(k2, (2, 4, 256, 384), dtype=jnp.float32)

    def refs(x):
        return {
            "relu": jnp.maximum(x, 0.0),
            "gelu": 0.5 * x * (1.0 + jax.lax.erf(x / math.sqrt(2.0))),
            "tanh": jnp.tanh(x),
            "sigmoid": jax.nn.sigmoid(x),
            "silu": x * jax.nn.sigmoid(x),
            "identity": x,
        }

    ok = True
    for x in (x_small, x_ragged, x_big):
        expected = refs(x)
        for name, ref in expected.items():
            act = Activation(name)
            y = jax.block_until_ready(act(x))
            assert y.shape == x.shape and y.dtype == x.dtype
            if not jnp.allclose(y, ref, atol=1e-5, rtol=1e-5):
                ok = False
                print(f"MISMATCH in {name} for shape {x.shape}")

    if ok:
        print("KERNEL_OK")
</pallas_src>

<mosaic_0001>
module attributes {stable_mosaic.version = 11 : i64} {
  func.func @_activation_kernel(%arg0: i32, %arg1: memref<16x128xf32, #tpu.memory_space<vmem>>, %arg2: memref<16x128xf32, #tpu.memory_space<vmem>>) attributes {dimension_semantics = [#tpu.dimension_semantics<parallel>], iteration_bounds = array<i64: 1>, scalar_prefetch = 0 : i64, scratch_operands = 0 : i64, tpu.core_type = #tpu.core_type<tc>, window_params = [{transform_indices = @transform_0, window_bounds = array<i64: 16, 128>}, {transform_indices = @transform_1, window_bounds = array<i64: 16, 128>}]} {
    %c0 = arith.constant 0 : index
    %c0_0 = arith.constant 0 : index
    %0 = vector.load %arg1[%c0, %c0_0] : memref<16x128xf32, #tpu.memory_space<vmem>>, vector<16x128xf32>
    %cst = arith.constant 0.000000e+00 : f32
    %1 = vector.broadcast %cst : f32 to vector<16x128xf32>
    %2 = arith.maximumf %0, %1 : vector<16x128xf32>
    %c0_1 = arith.constant 0 : index
    %c0_2 = arith.constant 0 : index
    %3 = vector.load %arg2[%c0_1, %c0_2] : memref<16x128xf32, #tpu.memory_space<vmem>>, vector<16x128xf32>
    tpu.vector_store %arg2[%c0_1, %c0_2], %2 {strides = array<i32>} : memref<16x128xf32, #tpu.memory_space<vmem>>, vector<16x128xf32>,
    return
  }
  func.func @transform_0(%arg0: i32) -> (i32, i32) {
    %c0_i32 = arith.constant 0 : i32
    %c0_i32_0 = arith.constant 0 : i32
    return %arg0, %c0_i32 : i32, i32
  }
  func.func @transform_1(%arg0: i32) -> (i32, i32) {
    %c0_i32 = arith.constant 0 : i32
    %c0_i32_0 = arith.constant 0 : i32
    return %arg0, %c0_i32 : i32, i32
  }
}

</mosaic_0001>

<bundles_post_ra>
// kernel: _apply_activation_pallas.1
= control target key start
LH: loop header
LB: loop body
LE: loop exit
PB: predicated region body
PF: predicated region fallthrough
CT: control target
= control target key end

     0   :  { %s40_s0 = inlined_call_operand.vmem [shape: f32[16,128], index: 0, kind: input, shape index: {}]   ;;  %s41_s1 = inlined_call_operand.vmem [shape: f32[16,128], index: 1, kind: output, shape index: {}]  }
   0x1   :  { %v8_v0 = vld [vmem:[%s40_s0] sm:$0xff]  ;;  %v9_v1 = vld [vmem:[%s40_s0 + $0x8] sm:$0xff] }
   0x2   :  { %v10_v2 = vmax.f32 %v8_v0, 0.0  ;;  %v11_v3 = vmax.f32 %v9_v1, 0.0 }
   0x4   :  { %12 = vst [vmem:[%s41_s1] sm:$0xff] %v10_v2 }
   0x5   :  { %13 = vst [vmem:[%s41_s1 + $0x8] sm:$0xff] %v11_v3 }

</bundles_post_ra>
